<compile_context>
chip_gen: v5e
topology: v5e:2x2
jax: 0.10.0
libtpu: 0.0.40
codegen_flags: <defaults>
</compile_context>

<pallas_src>
import functools

import jax
import jax.numpy as jnp
from jax.experimental import pallas as pl
from jax.experimental.pallas import tpu as pltpu


def _round_up(n, m):
    return -(-n // m) * m


def mlp_kernel(x_ref, w1_ref, b1_ref, wh_ref, bh_ref, wp_ref, bp_ref,
               o_ref, h_ref, *, apply_hidden):
    """One (batch-tile, layer) grid step.

    grid = (num_batch_tiles, num_layer_steps). The layer axis streams one hidden
    (H, H) weight slice per step while h_ref (VMEM scratch) carries activations.

    x_ref : (BM, Fp)      input tile, matmul dtype (bf16 by default)
    w1_ref: (Fp, Hp)      first-layer weight (in, out), matmul dtype, single-buffered
    b1_ref: (1, Hp)       first-layer bias, f32, single-buffered
    wh_ref: (1, Hp, Hp)   hidden weight slice for this step (double-buffered DMA)
    bh_ref: (1, 1, Hp)    hidden bias slice
    wp_ref: (1, Hp)       prediction-head weight row, f32 (VPU path), single-buffered
    bp_ref: (1, 1)        prediction-head bias, SMEM scalar
    o_ref : (BM, 1)       output tile, f32 (written only on the last layer step)
    h_ref : (BM, Hp)      f32 activation carry (VMEM scratch)
    """
    l = pl.program_id(1)
    cdt = w1_ref.dtype  # MXU operand dtype

    # First layer + ReLU, only on the first layer step of each batch tile.
    # MXU matmul accumulates in f32; bias/ReLU stay f32 on the VPU.
    @pl.when(l == 0)
    def _():
        z = jnp.dot(x_ref[...], w1_ref[...], preferred_element_type=jnp.float32)
        h_ref[...] = jnp.maximum(z + b1_ref[...], 0.0)

    # One hidden layer per grid step (weight slice DMA overlaps previous matmul).
    if apply_hidden:
        z = jnp.dot(h_ref[...].astype(cdt), wh_ref[0],
                    preferred_element_type=jnp.float32)
        h_ref[...] = jnp.maximum(z + bh_ref[0], 0.0)

    # Prediction head (out_features == 1): an N=1 MXU matmul would waste the
    # array, so do a VPU multiply + lane reduction.  keepdims=True keeps the
    # result sublane-major so the (BM, 1) store needs no sublane->lane relayout.
    @pl.when(l == pl.num_programs(1) - 1)
    def _():
        y = jnp.sum(h_ref[...] * wp_ref[...].astype(jnp.float32),
                    axis=-1, keepdims=True)                       # (BM, 1)
        o_ref[...] = y + bp_ref[0, 0]


@functools.partial(jax.jit, static_argnames=("block_m", "matmul_dtype"))
def net_forward(x, w1, b1, wh, bh, wp, bp, *, block_m=None,
                matmul_dtype=jnp.bfloat16):
    B, F = x.shape
    H = w1.shape[1]
    L = wh.shape[0]

    # --- static tiling decisions -------------------------------------------
    if block_m is None:
        # Large batch tiles amortize the ~0.35 us/grid-step overhead; keep at
        # least 2 tiles so the "parallel" batch axis occupies both v7x cores.
        block_m = max(8, min(512, _round_up(-(-B // 2), 8)))
    F_pad = _round_up(F, 128)   # K of the first matmul: fill the 128-lane vregs
    H_pad = _round_up(H, 128)   # K/N of hidden matmuls + head reduction width

    num_tiles = -(-B // block_m)
    B_pad = num_tiles * block_m

    # --- zero-pad to aligned shapes (exact: padded cols stay 0 everywhere) --
    # TODO(synk): for very large B the full jnp.pad copy of x could be avoided
    # by masking only the last tile.
    if (B_pad, F_pad) != (B, F):
        x = jnp.pad(x, ((0, B_pad - B), (0, F_pad - F)))
    xq = x.astype(matmul_dtype)
    w1p = jnp.pad(w1, ((0, F_pad - F), (0, H_pad - H))).astype(matmul_dtype)
    b1p = jnp.pad(b1, ((0, 0), (0, H_pad - H))).astype(jnp.float32)
    wpp = jnp.pad(wp, ((0, 0), (0, H_pad - H))).astype(jnp.float32)
    if L > 0:
        whp = jnp.pad(wh, ((0, 0), (0, H_pad - H), (0, H_pad - H))).astype(matmul_dtype)
        bhp = jnp.pad(bh, ((0, 0), (0, 0), (0, H_pad - H))).astype(jnp.float32)
        apply_hidden = True
        layer_steps = L
    else:  # no hidden layers: dummy slice; kernel statically skips the hidden matmul
        whp = jnp.zeros((1, H_pad, H_pad), matmul_dtype)
        bhp = jnp.zeros((1, 1, H_pad), jnp.float32)
        apply_hidden = False
        layer_steps = 1

    # --- VMEM budget: x(2 bufs) + w1(1) + streamed wh slice(2) + biases + h + out
    it = jnp.dtype(matmul_dtype).itemsize
    vmem_need = (2 * block_m * F_pad * it          # x tile, double-buffered
                 + F_pad * H_pad * it              # w1, single-buffered
                 + 2 * H_pad * H_pad * it          # wh slice, double-buffered
                 + 4 * H_pad * 4                   # b1 + bh slice (x2) + wp
                 + block_m * H_pad * 4             # h carry scratch
                 + 2 * block_m * 4)                # output tile, double-buffered
    vmem_limit = max(16 << 20, min(int(vmem_need * 1.25) + (2 << 20), 100 << 20))

    const = pl.Buffered(1)   # grid-invariant operands: drop the second pipeline buffer
    out = pl.pallas_call(
        functools.partial(mlp_kernel, apply_hidden=apply_hidden),
        out_shape=jax.ShapeDtypeStruct((B_pad, 1), jnp.float32),
        grid_spec=pltpu.PrefetchScalarGridSpec(
            num_scalar_prefetch=0,
            grid=(num_tiles, layer_steps),
            in_specs=[
                pl.BlockSpec((block_m, F_pad), lambda i, l: (i, 0)),      # x tile
                pl.BlockSpec((F_pad, H_pad), lambda i, l: (0, 0),
                             pipeline_mode=const),                        # w1
                pl.BlockSpec((1, H_pad), lambda i, l: (0, 0),
                             pipeline_mode=const),                        # b1
                pl.BlockSpec((1, H_pad, H_pad), lambda i, l: (l, 0, 0)),  # wh[l]
                pl.BlockSpec((1, 1, H_pad), lambda i, l: (l, 0, 0)),      # bh[l]
                pl.BlockSpec((1, H_pad), lambda i, l: (0, 0),
                             pipeline_mode=const),                        # wp
                pl.BlockSpec(memory_space=pltpu.MemorySpace.SMEM),        # bp scalar
            ],
            out_specs=pl.BlockSpec((block_m, 1), lambda i, l: (i, 0)),
            scratch_shapes=[pltpu.VMEM((block_m, H_pad), jnp.float32)],   # h carry
        ),
        compiler_params=pltpu.CompilerParams(
            dimension_semantics=("parallel", "arbitrary"),  # batch tiles shard across TCs
            vmem_limit_bytes=vmem_limit,
        ),
    )(xq, w1p, b1p, whp, bhp, wpp, bp)

    return out[:B]


def init_params(key, feature_dim, hidden_dim, hidden_layer_num):
    """Deterministic synthetic init (uniform, like torch's default scale)."""
    ks = jax.random.split(key, 6)

    def uni(k, shape, fan_in):
        bound = 1.0 / jnp.sqrt(fan_in)
        return jax.random.uniform(k, shape, jnp.float32, -bound, bound)

    w1 = uni(ks[0], (feature_dim, hidden_dim), feature_dim)
    b1 = uni(ks[1], (1, hidden_dim), feature_dim)
    wh = uni(ks[2], (hidden_layer_num, hidden_dim, hidden_dim), hidden_dim)
    bh = uni(ks[3], (hidden_layer_num, 1, hidden_dim), hidden_dim)
    wp = uni(ks[4], (1, hidden_dim), hidden_dim)          # stored as a row
    bp = uni(ks[5], (1, 1), hidden_dim)
    return w1, b1, wh, bh, wp, bp


def reference_forward(x, w1, b1, wh, bh, wp, bp):
    """Pure-JAX reference matching the PyTorch module's forward."""
    h = jax.nn.relu(x @ w1 + b1)
    for i in range(wh.shape[0]):
        h = jax.nn.relu(h @ wh[i] + bh[i])
    return h @ wp.T + bp


if __name__ == "__main__":
    feature_dim, hidden_dim, hidden_layer_num = 16, 32, 2
    batch = 512   # default block_m picks 256 -> 2 parallel tiles

    key = jax.random.PRNGKey(0)
    kx, kp = jax.random.split(key)
    x = jax.random.normal(kx, (batch, feature_dim), jnp.float32)
    params = init_params(kp, feature_dim, hidden_dim, hidden_layer_num)
    ref = reference_forward(x, *params)

    # f32 MXU-operand path: tight check vs reference.
    out = jax.block_until_ready(net_forward(x, *params, matmul_dtype=jnp.float32))
    assert out.shape == (batch, 1), out.shape
    assert jnp.allclose(out, ref, atol=1e-4, rtol=1e-4)

    # bf16 MXU-operand default path (f32 accumulation) -> looser tolerance.
    out_bf16 = jax.block_until_ready(net_forward(x, *params))
    assert out_bf16.shape == (batch, 1), out_bf16.shape
    assert jnp.allclose(out_bf16, ref, atol=1e-1, rtol=1e-1)

    # Deep stack (6 streamed layer steps) + ragged batch (exercises padding).
    params_deep = init_params(kp, feature_dim, hidden_dim, 6)
    x2 = jax.random.normal(kx, (300, feature_dim), jnp.float32)
    ref2 = reference_forward(x2, *params_deep)
    out2 = jax.block_until_ready(
        net_forward(x2, *params_deep, block_m=128, matmul_dtype=jnp.float32))
    assert out2.shape == (300, 1), out2.shape
    assert jnp.allclose(out2, ref2, atol=1e-4, rtol=1e-4)

    # No-hidden-layer configuration (L == 0 static path).
    params0 = init_params(kp, feature_dim, hidden_dim, 0)
    x3 = jax.random.normal(kx, (64, feature_dim), jnp.float32)
    ref3 = reference_forward(x3, *params0)
    out3 = jax.block_until_ready(net_forward(x3, *params0, matmul_dtype=jnp.float32))
    assert out3.shape == (64, 1), out3.shape
    assert jnp.allclose(out3, ref3, atol=1e-4, rtol=1e-4)

    print("KERNEL_OK")
</pallas_src>

<mosaic_0001>
module attributes {stable_mosaic.version = 11 : i64} {
  func.func @mlp_kernel(%arg0: i32, %arg1: i32, %arg2: memref<256x128xf32, #tpu.memory_space<vmem>>, %arg3: memref<128x128xf32, #tpu.memory_space<vmem>>, %arg4: memref<1x128xf32, #tpu.memory_space<vmem>>, %arg5: memref<1x128x128xf32, #tpu.memory_space<vmem>>, %arg6: memref<1x1x128xf32, #tpu.memory_space<vmem>>, %arg7: memref<1x128xf32, #tpu.memory_space<vmem>>, %arg8: memref<1x1xf32, #tpu.memory_space<smem>>, %arg9: memref<256x1xf32, #tpu.memory_space<vmem>>, %arg10: memref<256x128xf32, #tpu.memory_space<vmem>>) attributes {dimension_semantics = [#tpu.dimension_semantics<parallel>, #tpu.dimension_semantics<arbitrary>], iteration_bounds = array<i64: 2, 2>, scalar_prefetch = 0 : i64, scratch_operands = 1 : i64, tpu.core_type = #tpu.core_type<tc>, window_params = [{transform_indices = @transform_0, window_bounds = array<i64: 256, 128>}, {pipeline_mode = #tpu.pipeline_mode<synchronous>, transform_indices = @transform_1, window_bounds = array<i64: 128, 128>}, {pipeline_mode = #tpu.pipeline_mode<synchronous>, transform_indices = @transform_2, window_bounds = array<i64: 1, 128>}, {transform_indices = @transform_3, window_bounds = array<i64: 1, 128, 128>}, {transform_indices = @transform_4, window_bounds = array<i64: 1, 1, 128>}, {pipeline_mode = #tpu.pipeline_mode<synchronous>, transform_indices = @transform_5, window_bounds = array<i64: 1, 128>}, {transform_indices = @transform_6, window_bounds = array<i64: 1, 1>}, {transform_indices = @transform_7, window_bounds = array<i64: 256, 1>}]} {
    %c0_i32 = arith.constant 0 : i32
    %0 = arith.cmpi eq, %arg1, %c0_i32 : i32
    %1 = arith.extui %0 : i1 to i32
    %c0_i32_0 = arith.constant 0 : i32
    %2 = arith.cmpi ne, %1, %c0_i32_0 : i32
    scf.if %2 {
      %c0_12 = arith.constant 0 : index
      %c0_13 = arith.constant 0 : index
      %17 = vector.load %arg2[%c0_12, %c0_13] : memref<256x128xf32, #tpu.memory_space<vmem>>, vector<256x128xf32>
      %c0_14 = arith.constant 0 : index
      %c0_15 = arith.constant 0 : index
      %18 = vector.load %arg3[%c0_14, %c0_15] : memref<128x128xf32, #tpu.memory_space<vmem>>, vector<128x128xf32>
      %cst_16 = arith.constant dense<0.000000e+00> : vector<256x128xf32>
      %19 = tpu.matmul %17, %18, %cst_16 {dimension_numbers = #tpu.dot_dimension_numbers<[1], [0], [0], [1], [0, 0, 1, 1], [], []>} : vector<256x128xf32>, vector<128x128xf32>, vector<256x128xf32> -> vector<256x128xf32>
      %c0_17 = arith.constant 0 : index
      %c0_18 = arith.constant 0 : index
      %20 = vector.load %arg4[%c0_17, %c0_18] : memref<1x128xf32, #tpu.memory_space<vmem>>, vector<1x128xf32>
      %21 = vector.broadcast %20 : vector<1x128xf32> to vector<256x128xf32>
      %22 = arith.addf %19, %21 : vector<256x128xf32>
      %cst_19 = arith.constant 0.000000e+00 : f32
      %23 = vector.broadcast %cst_19 : f32 to vector<256x128xf32>
      %24 = arith.maximumf %22, %23 : vector<256x128xf32>
      %c0_20 = arith.constant 0 : index
      %c0_21 = arith.constant 0 : index
      %25 = vector.load %arg10[%c0_20, %c0_21] : memref<256x128xf32, #tpu.memory_space<vmem>>, vector<256x128xf32>
      tpu.vector_store %arg10[%c0_20, %c0_21], %24 {strides = array<i32>} : memref<256x128xf32, #tpu.memory_space<vmem>>, vector<256x128xf32>,
    } else {
    }
    %c0 = arith.constant 0 : index
    %c0_1 = arith.constant 0 : index
    %3 = vector.load %arg10[%c0, %c0_1] : memref<256x128xf32, #tpu.memory_space<vmem>>, vector<256x128xf32>
    %c0_2 = arith.constant 0 : index
    %c0_3 = arith.constant 0 : index
    %c0_4 = arith.constant 0 : index
    %4 = vector.load %arg5[%c0_2, %c0_3, %c0_4] : memref<1x128x128xf32, #tpu.memory_space<vmem>>, vector<1x128x128xf32>
    %5 = vector.shape_cast %4 : vector<1x128x128xf32> to vector<128x128xf32>
    %cst = arith.constant dense<0.000000e+00> : vector<256x128xf32>
    %6 = tpu.matmul %3, %5, %cst {dimension_numbers = #tpu.dot_dimension_numbers<[1], [0], [0], [1], [0, 0, 1, 1], [], []>} : vector<256x128xf32>, vector<128x128xf32>, vector<256x128xf32> -> vector<256x128xf32>
    %c0_5 = arith.constant 0 : index
    %c0_6 = arith.constant 0 : index
    %c0_7 = arith.constant 0 : index
    %7 = vector.load %arg6[%c0_5, %c0_6, %c0_7] : memref<1x1x128xf32, #tpu.memory_space<vmem>>, vector<1x1x128xf32>
    %8 = vector.shape_cast %7 : vector<1x1x128xf32> to vector<1x128xf32>
    %9 = vector.broadcast %8 : vector<1x128xf32> to vector<256x128xf32>
    %10 = arith.addf %6, %9 : vector<256x128xf32>
    %cst_8 = arith.constant 0.000000e+00 : f32
    %11 = vector.broadcast %cst_8 : f32 to vector<256x128xf32>
    %12 = arith.maximumf %10, %11 : vector<256x128xf32>
    %c0_9 = arith.constant 0 : index
    %c0_10 = arith.constant 0 : index
    %13 = vector.load %arg10[%c0_9, %c0_10] : memref<256x128xf32, #tpu.memory_space<vmem>>, vector<256x128xf32>
    tpu.vector_store %arg10[%c0_9, %c0_10], %12 {strides = array<i32>} : memref<256x128xf32, #tpu.memory_space<vmem>>, vector<256x128xf32>,
    %c1_i32 = arith.constant 1 : i32
    %14 = arith.cmpi eq, %arg1, %c1_i32 : i32
    %15 = arith.extui %14 : i1 to i32
    %c0_i32_11 = arith.constant 0 : i32
    %16 = arith.cmpi ne, %15, %c0_i32_11 : i32
    scf.if %16 {
      %c0_12 = arith.constant 0 : index
      %c0_13 = arith.constant 0 : index
      %17 = vector.load %arg10[%c0_12, %c0_13] : memref<256x128xf32, #tpu.memory_space<vmem>>, vector<256x128xf32>
      %c0_14 = arith.constant 0 : index
      %c0_15 = arith.constant 0 : index
      %18 = vector.load %arg7[%c0_14, %c0_15] : memref<1x128xf32, #tpu.memory_space<vmem>>, vector<1x128xf32>
      %19 = vector.broadcast %18 : vector<1x128xf32> to vector<256x128xf32>
      %20 = arith.mulf %17, %19 : vector<256x128xf32>
      %cst_16 = arith.constant dense<0.000000e+00> : vector<256xf32>
      %21 = vector.multi_reduction <add>, %20, %cst_16 [1] : vector<256x128xf32> to vector<256xf32>
      %22 = vector.shape_cast %21 : vector<256xf32> to vector<256x1xf32>
      %c0_17 = arith.constant 0 : index
      %c0_18 = arith.constant 0 : index
      %23 = memref.load %arg8[%c0_17, %c0_18] : memref<1x1xf32, #tpu.memory_space<smem>>
      %24 = vector.broadcast %23 : f32 to vector<256x1xf32>
      %25 = arith.addf %22, %24 : vector<256x1xf32>
      %c0_19 = arith.constant 0 : index
      %c0_20 = arith.constant 0 : index
      %26 = vector.load %arg9[%c0_19, %c0_20] : memref<256x1xf32, #tpu.memory_space<vmem>>, vector<256x1xf32>
      tpu.vector_store %arg9[%c0_19, %c0_20], %25 {strides = array<i32>} : memref<256x1xf32, #tpu.memory_space<vmem>>, vector<256x1xf32>,
    } else {
    }
    return
  }
  func.func @transform_0(%arg0: i32, %arg1: i32) -> (i32, i32) {
    %c0_i32 = arith.constant 0 : i32
    %c0_i32_0 = arith.constant 0 : i32
    return %arg0, %c0_i32 : i32, i32
  }
  func.func @transform_1(%arg0: i32, %arg1: i32) -> (i32, i32) {
    %c0_i32 = arith.constant 0 : i32
    %c0_i32_0 = arith.constant 0 : i32
    %c0_i32_1 = arith.constant 0 : i32
    return %c0_i32, %c0_i32_0 : i32, i32
  }
  func.func @transform_2(%arg0: i32, %arg1: i32) -> (i32, i32) {
    %c0_i32 = arith.constant 0 : i32
    %c0_i32_0 = arith.constant 0 : i32
    %c0_i32_1 = arith.constant 0 : i32
    return %c0_i32, %c0_i32_0 : i32, i32
  }
  func.func @transform_3(%arg0: i32, %arg1: i32) -> (i32, i32, i32) {
    %c0_i32 = arith.constant 0 : i32
    %c0_i32_0 = arith.constant 0 : i32
    %c0_i32_1 = arith.constant 0 : i32
    return %arg1, %c0_i32, %c0_i32_0 : i32, i32, i32
  }
  func.func @transform_4(%arg0: i32, %arg1: i32) -> (i32, i32, i32) {
    %c0_i32 = arith.constant 0 : i32
    %c0_i32_0 = arith.constant 0 : i32
    %c0_i32_1 = arith.constant 0 : i32
    return %arg1, %c0_i32, %c0_i32_0 : i32, i32, i32
  }
  func.func @transform_5(%arg0: i32, %arg1: i32) -> (i32, i32) {
    %c0_i32 = arith.constant 0 : i32
    %c0_i32_0 = arith.constant 0 : i32
    %c0_i32_1 = arith.constant 0 : i32
    return %c0_i32, %c0_i32_0 : i32, i32
  }
  func.func @transform_6(%arg0: i32, %arg1: i32) -> (i32, i32) {
    %c0_i32 = arith.constant 0 : i32
    %c0_i32_0 = arith.constant 0 : i32
    %c0_i32_1 = arith.constant 0 : i32
    return %c0_i32, %c0_i32_0 : i32, i32
  }
  func.func @transform_7(%arg0: i32, %arg1: i32) -> (i32, i32) {
    %c0_i32 = arith.constant 0 : i32
    %c0_i32_0 = arith.constant 0 : i32
    return %arg0, %c0_i32 : i32, i32
  }
}

</mosaic_0001>

<bundles_post_ra>
// kernel: net_forward.1
= control target key start
LH: loop header
LB: loop body
LE: loop exit
PB: predicated region body
PF: predicated region fallthrough
CT: control target
= control target key end

     0   :  { %s1321_s26 = smov 0   ;;  %s1323_s27 = smov 0   ;;  %s1701_s0 = inlined_call_operand.vmem [shape: f32[512,128], index: 0, kind: input, shape index: {}]   ;;  %s1702_s1 = inlined_call_operand.vmem [shape: f32[128,128], index: 1, kind: input, shape index: {}]   ;;  %s1703_s2 = inlined_call_operand.vmem [shape: f32[1,128], index: 2, kind: input, shape index: {}]   ;;  %s1704_s3 = inlined_call_operand.vmem [shape: f32[2,128,128], index: 3, kind: input, shape index: {}]   ;;  %s1705_s4 = inlined_call_operand.vmem [shape: f32[2,1,128], index: 4, kind: input, shape index: {}]   ;;  %s1706_s5 = inlined_call_operand.vmem [shape: f32[1,128], index: 5, kind: input, shape index: {}]   ;;  %s1707_s6 = inlined_call_operand.<no memory space> [shape: f32[1,1], index: 6, kind: input, shape index: {}]   ;;  %s1708_s7 = inlined_call_operand.vmem [shape: f32[512,1], index: 7, kind: output, shape index: {}]  }
   0x1   :  { %12 = sst [smem:[#allocation3]] %s1707_s6  ;;  %s1325_s28 = smov 0  }
   0x2   :  { %s1327_s29 = smov 0   ;;  %s1329_s30 = smov 0  }
   0x3 LB: > { %s27_s6 = sadd.s32 1, %s1268_s28  ;;  %s30_s8 = sadd.s32 1, %s1272_s29  ;;  %s1276_s30 = sphi %s1329_s30, %s18_s30   ;;  %s1272_s29 = sphi %s1327_s29, %s1712_s29   ;;  %s1268_s28 = sphi %s1325_s28, %s1711_s28   ;;  %s1264_s27 = sphi %s1323_s27, %s1710_s27   ;;  %s1260_s26 = sphi %s1321_s26, %s1709_s26  }
   0x4   : > { %p28_p0 = scmp.ge.s32.totalorder %s27_s6, 2  ;;  %p1087_p1 = scmp.ge.s32.totalorder %s1276_s30, 1 }
   0x5   : > { %p269_p2 = scmp.lt.s32.totalorder %s1276_s30, 5 }
   0x6   : > { %s1714_s6 = smov (%p28_p0, %s27_s6), 0  ;;  %s1716_s8 = smov (!%p28_p0, %s30_s8), %s1272_s29 }
   0x7   : > { %p270_p3 = pnand %p1087_p1, %p269_p2  ;;  %p32_p4 = scmp.ge.s32.totalorder %s1716_s8, 2 }
   0x8   : > { %s1088_s9 = sshll.u32 (!%p270_p3), %s1264_s27, 5  ;;  %p315_p5 = scmp.lt.s32.totalorder (!%p270_p3), %s1260_s26, 1 }
   0x9   : > { %s1718_s8 = smov (%p32_p4, %s1716_s8), 0  ;;  %273 = sbr.rel (%p270_p3) target bundleno = 675 (0x2a3), region = 48 }
   0xa   : > { %p310_p6 = scmp.lt.s32.totalorder (!%p270_p3), %s1088_s9, 63  ;;  %p1094_p7 = scmp.ne.s32.totalorder (!%p270_p3), %s1260_s26, 0 }
   0xe   : > { %s1355_s10 = scalar_select %p315_p5, %s1260_s26, 1 }
   0xf   : > { %s1720_s9 = smov (!%p310_p6, %s1088_s9), 63  ;;  %332 = sbr.rel (%p1094_p7) target bundleno = 246 (0xf6), region = 52 }
  0x10   : > { %s1098_s11 = sshll.u32 %s1355_s10, 7  ;;  %s322_s14 = scalar_lea.vmem %s1705_s4, %s1355_s10 }
  0x11   : > { %s1089_s15 = sshll.u32 %s1720_s9, 3  ;;  %s1365_s18 = scalar_lea.vmem %s1704_s3, %s1098_s11 }
  0x12   : > { %s1370_s21 = scalar_lea.vmem %s1701_s0, %s1089_s15  ;;  %s1375_s24 = scalar_lea.vmem %s1708_s7, %s1089_s15 }
  0x14   : > { %v380_v0 = vld [vmem:[%s1702_s1 + $0x78] sm:$0xff]  ;;  %v379_v1 = vld [vmem:[%s1702_s1 + $0x70] sm:$0xff]  ;;  %v378_v2 = vld [vmem:[%s1702_s1 + $0x68] sm:$0xff] }
  0x15   : > { %1100 = vmatpush.msra.mxu2 %v380_v0  ;;  %1101 = vmatpush.msra.mxu3 %v380_v0  ;;  %v377_v3 = vld [vmem:[%s1702_s1 + $0x60] sm:$0xff]  ;;  %v376_v4 = vld [vmem:[%s1702_s1 + $0x58] sm:$0xff]  ;;  %v375_v5 = vld [vmem:[%s1702_s1 + $0x50] sm:$0xff] }
  0x16   : > { %385 = vmatpush.msra.mxu0 %v380_v0  ;;  %1099 = vmatpush.msra.mxu1 %v380_v0  ;;  %v374_v6 = vld [vmem:[%s1702_s1 + $0x48] sm:$0xff]  ;;  %v373_v7 = vld [vmem:[%s1702_s1 + $0x40] sm:$0xff]  ;;  %v372_v8 = vld [vmem:[%s1702_s1 + $0x38] sm:$0xff] }
  0x17   : > { %1103 = vmatpush.msra.mxu2 %v379_v1  ;;  %1104 = vmatpush.msra.mxu3 %v379_v1  ;;  %v371_v9 = vld [vmem:[%s1702_s1 + $0x30] sm:$0xff]  ;;  %v370_v10 = vld [vmem:[%s1702_s1 + $0x28] sm:$0xff]  ;;  %v369_v11 = vld [vmem:[%s1702_s1 + $0x20] sm:$0xff] }
  0x18   : > { %386 = vmatpush.msra.mxu0 %v379_v1  ;;  %1102 = vmatpush.msra.mxu1 %v379_v1  ;;  %v368_v12 = vld [vmem:[%s1702_s1 + $0x18] sm:$0xff]  ;;  %v367_v13 = vld [vmem:[%s1702_s1 + $0x10] sm:$0xff]  ;;  %v366_v14 = vld [vmem:[%s1702_s1 + $0x8] sm:$0xff] }
  0x19   : > { %1106 = vmatpush.msra.mxu2 %v378_v2  ;;  %1107 = vmatpush.msra.mxu3 %v378_v2  ;;  %v365_v15 = vld [vmem:[%s1702_s1] sm:$0xff]  ;;  %v350_v20 = vld [vmem:[%s1370_s21 + $0x88] sm:$0xff]  ;;  %v351_v24 = vld [vmem:[%s1370_s21 + $0x90] sm:$0xff] }
  0x1a   : > { %387 = vmatpush.msra.mxu0 %v378_v2  ;;  %1105 = vmatpush.msra.mxu1 %v378_v2  ;;  %v349_v16 = vld [vmem:[%s1370_s21 + $0x80] sm:$0xff]  ;;  %v358_v21 = vld [vmem:[%s1370_s21 + $0xc8] sm:$0xff]  ;;  %v359_v25 = vld [vmem:[%s1370_s21 + $0xd0] sm:$0xff] }
  0x1b   : > { %1109 = vmatpush.msra.mxu2 %v377_v3  ;;  %1110 = vmatpush.msra.mxu3 %v377_v3  ;;  %v357_v17 = vld [vmem:[%s1370_s21 + $0xc0] sm:$0xff]  ;;  %v334_v22 = vld [vmem:[%s1370_s21 + $0x8] sm:$0xff]  ;;  %v335_v26 = vld [vmem:[%s1370_s21 + $0x10] sm:$0xff] }
  0x1c   : > { %388 = vmatpush.msra.mxu0 %v377_v3  ;;  %1108 = vmatpush.msra.mxu1 %v377_v3  ;;  %v333_v18 = vld [vmem:[%s1370_s21] sm:$0xff]  ;;  %v342_v23 = vld [vmem:[%s1370_s21 + $0x48] sm:$0xff]  ;;  %v343_v27 = vld [vmem:[%s1370_s21 + $0x50] sm:$0xff] }
  0x1d   : > { %1112 = vmatpush.msra.mxu2 %v376_v4  ;;  %1113 = vmatpush.msra.mxu3 %v376_v4  ;;  %v341_v19 = vld [vmem:[%s1370_s21 + $0x40] sm:$0xff]  ;;  %v352_v28 = vld [vmem:[%s1370_s21 + $0x98] sm:$0xff]  ;;  %v354_v36 = vld [vmem:[%s1370_s21 + $0xa8] sm:$0xff] }
  0x1e   : > { %389 = vmatpush.msra.mxu0 %v376_v4  ;;  %1111 = vmatpush.msra.mxu1 %v376_v4  ;;  %v360_v29 = vld [vmem:[%s1370_s21 + $0xd8] sm:$0xff]  ;;  %v353_v32 = vld [vmem:[%s1370_s21 + $0xa0] sm:$0xff]  ;;  %v362_v37 = vld [vmem:[%s1370_s21 + $0xe8] sm:$0xff] }
  0x1f   : > { %1115 = vmatpush.msra.mxu2 %v375_v5  ;;  %1116 = vmatpush.msra.mxu3 %v375_v5  ;;  %v336_v30 = vld [vmem:[%s1370_s21 + $0x18] sm:$0xff]  ;;  %v361_v33 = vld [vmem:[%s1370_s21 + $0xe0] sm:$0xff]  ;;  %v338_v38 = vld [vmem:[%s1370_s21 + $0x28] sm:$0xff] }
  0x20   : > { %390 = vmatpush.msra.mxu0 %v375_v5  ;;  %1114 = vmatpush.msra.mxu1 %v375_v5  ;;  %v344_v31 = vld [vmem:[%s1370_s21 + $0x58] sm:$0xff]  ;;  %v337_v34 = vld [vmem:[%s1370_s21 + $0x20] sm:$0xff]  ;;  %v346_v39 = vld [vmem:[%s1370_s21 + $0x68] sm:$0xff] }
  0x21   : > { %1118 = vmatpush.msra.mxu2 %v374_v6  ;;  %1119 = vmatpush.msra.mxu3 %v374_v6  ;;  %v345_v35 = vld [vmem:[%s1370_s21 + $0x60] sm:$0xff]  ;;  %v355_v40 = vld [vmem:[%s1370_s21 + $0xb0] sm:$0xff]  ;;  %v356_v44 = vld [vmem:[%s1370_s21 + $0xb8] sm:$0xff] }
  0x22   : > { %391 = vmatpush.msra.mxu0 %v374_v6  ;;  %1117 = vmatpush.msra.mxu1 %v374_v6  ;;  %v363_v41 = vld [vmem:[%s1370_s21 + $0xf0] sm:$0xff]  ;;  %v364_v45 = vld [vmem:[%s1370_s21 + $0xf8] sm:$0xff]  ;;  %v1461_v48 = vld [vmem:[%s1703_s2] ss:$0 sm:$0xff] }
  0x23   : > { %1121 = vmatpush.msra.mxu2 %v373_v7  ;;  %1122 = vmatpush.msra.mxu3 %v373_v7  ;;  %v339_v42 = vld [vmem:[%s1370_s21 + $0x30] sm:$0xff]  ;;  %v340_v46 = vld [vmem:[%s1370_s21 + $0x38] sm:$0xff] }
  0x24   : > { %392 = vmatpush.msra.mxu0 %v373_v7  ;;  %1120 = vmatpush.msra.mxu1 %v373_v7  ;;  %v347_v43 = vld [vmem:[%s1370_s21 + $0x70] sm:$0xff]  ;;  %v348_v47 = vld [vmem:[%s1370_s21 + $0x78] sm:$0xff] }
  0x25   : > { %1124 = vmatpush.msra.mxu2 %v372_v8  ;;  %1125 = vmatpush.msra.mxu3 %v372_v8 }
  0x26   : > { %393 = vmatpush.msra.mxu0 %v372_v8  ;;  %1123 = vmatpush.msra.mxu1 %v372_v8 }
  0x27   : > { %1127 = vmatpush.msra.mxu2 %v371_v9  ;;  %1128 = vmatpush.msra.mxu3 %v371_v9 }
  0x28   : > { %394 = vmatpush.msra.mxu0 %v371_v9  ;;  %1126 = vmatpush.msra.mxu1 %v371_v9 }
  0x29   : > { %1130 = vmatpush.msra.mxu2 %v370_v10  ;;  %1131 = vmatpush.msra.mxu3 %v370_v10 }
  0x2a   : > { %395 = vmatpush.msra.mxu0 %v370_v10  ;;  %1129 = vmatpush.msra.mxu1 %v370_v10 }
  0x2b   : > { %1133 = vmatpush.msra.mxu2 %v369_v11  ;;  %1134 = vmatpush.msra.mxu3 %v369_v11 }
  0x2c   : > { %396 = vmatpush.msra.mxu0 %v369_v11  ;;  %1132 = vmatpush.msra.mxu1 %v369_v11 }
  0x2d   : > { %1136 = vmatpush.msra.mxu2 %v368_v12  ;;  %1137 = vmatpush.msra.mxu3 %v368_v12 }
  0x2e   : > { %397 = vmatpush.msra.mxu0 %v368_v12  ;;  %1135 = vmatpush.msra.mxu1 %v368_v12 }
  0x2f   : > { %1139 = vmatpush.msra.mxu2 %v367_v13  ;;  %1140 = vmatpush.msra.mxu3 %v367_v13 }
  0x30   : > { %398 = vmatpush.msra.mxu0 %v367_v13  ;;  %1138 = vmatpush.msra.mxu1 %v367_v13 }
  0x31   : > { %1142 = vmatpush.msra.mxu2 %v366_v14  ;;  %1143 = vmatpush.msra.mxu3 %v366_v14 }
  0x32   : > { %399 = vmatpush.msra.mxu0 %v366_v14  ;;  %1141 = vmatpush.msra.mxu1 %v366_v14 }
  0x33   : > { %1145 = vmatpush.msra.mxu2 %v365_v15  ;;  %1146 = vmatpush.msra.mxu3 %v365_v15 }
  0x34   : > { %449 = vmatmul.f32.vlgmr.msra.gmra.mxu2 %v349_v16  ;;  %473 = vmatmul.f32.vlgmr.msra.gmra.mxu3 %v357_v17 }
  0x35   : > { %400 = vmatpush.msra.mxu0 %v365_v15  ;;  %1144 = vmatpush.msra.mxu1 %v365_v15 }
  0x36   : > { %401 = vmatmul.f32.vlgmr.msra.gmra.mxu0 %v333_v18  ;;  %425 = vmatmul.f32.vlgmr.msra.gmra.mxu1 %v341_v19 }
  0x3c   : > { %452 = vmatmul.f32.gmra.mxu2 %v350_v20  ;;  %476 = vmatmul.f32.gmra.mxu3 %v358_v21 }
  0x3e   : > { %404 = vmatmul.f32.gmra.mxu0 %v334_v22  ;;  %428 = vmatmul.f32.gmra.mxu1 %v342_v23 }
  0x44   : > { %455 = vmatmul.f32.gmra.mxu2 %v351_v24  ;;  %479 = vmatmul.f32.gmra.mxu3 %v359_v25 }
  0x46   : > { %407 = vmatmul.f32.gmra.mxu0 %v335_v26  ;;  %431 = vmatmul.f32.gmra.mxu1 %v343_v27 }
  0x4c   : > { %458 = vmatmul.f32.gmra.mxu2 %v352_v28  ;;  %482 = vmatmul.f32.gmra.mxu3 %v360_v29 }
  0x4e   : > { %410 = vmatmul.f32.gmra.mxu0 %v336_v30  ;;  %434 = vmatmul.f32.gmra.mxu1 %v344_v31 }
  0x54   : > { %461 = vmatmul.f32.gmra.mxu2 %v353_v32  ;;  %485 = vmatmul.f32.gmra.mxu3 %v361_v33 }
  0x56   : > { %413 = vmatmul.f32.gmra.mxu0 %v337_v34  ;;  %437 = vmatmul.f32.gmra.mxu1 %v345_v35 }
  0x5c   : > { %464 = vmatmul.f32.gmra.mxu2 %v354_v36  ;;  %488 = vmatmul.f32.gmra.mxu3 %v362_v37 }
  0x5e   : > { %416 = vmatmul.f32.gmra.mxu0 %v338_v38  ;;  %440 = vmatmul.f32.gmra.mxu1 %v346_v39 }
  0x64   : > { %467 = vmatmul.f32.gmra.mxu2 %v355_v40  ;;  %491 = vmatmul.f32.gmra.mxu3 %v363_v41 }
  0x66   : > { %419 = vmatmul.f32.gmra.mxu0 %v339_v42  ;;  %443 = vmatmul.f32.gmra.mxu1 %v347_v43 }
  0x6c   : > { %470 = vmatmul.f32.gmra.mxu2 %v356_v44  ;;  %494 = vmatmul.f32.gmra.mxu3 %v364_v45 }
  0x6e   : > { %422 = vmatmul.f32.gmra.mxu0 %v340_v46  ;;  %446 = vmatmul.f32.gmra.mxu1 %v348_v47 }
  0xb3   : > { %v402_v49 = vpop.f32.mrf.mxu0  ;;  %v426_v50 = vpop.f32.mrf.mxu1 }
  0xb4   : > { %v403_v51 = vadd.f32 %v1461_v48, %v402_v49  ;;  %v427_v52 = vadd.f32 %v1461_v48, %v426_v50 }
  0xb6   : > { %v498_v53 = vmax.f32 %v403_v51, 0.0  ;;  %v506_v54 = vmax.f32 %v427_v52, 0.0 }
  0xb7   : > { %v450_v55 = vpop.f32.mrf.mxu2  ;;  %v474_v56 = vpop.f32.mrf.mxu3 }
  0xb8   : > { %530 = vst [vmem:[#allocation2 + $0xb0] sm:$0xff] %v498_v53  ;;  %v451_v57 = vadd.f32 %v1461_v48, %v450_v55  ;;  %v475_v58 = vadd.f32 %v1461_v48, %v474_v56 }
  0xb9   : > { %538 = vst [vmem:[#allocation2 + $0x80] sm:$0xff] %v506_v54 }
  0xba   : > { %v514_v59 = vmax.f32 %v451_v57, 0.0  ;;  %v522_v60 = vmax.f32 %v475_v58, 0.0 }
  0xbb   : > { %v405_v61 = vpop.f32.mrf.mxu0  ;;  %v429_v62 = vpop.f32.mrf.mxu1 }
  0xbc   : > { %546 = vst [vmem:[#allocation2 + $0x38] sm:$0xff] %v514_v59  ;;  %v406_v63 = vadd.f32 %v1461_v48, %v405_v61  ;;  %v430_v0 = vadd.f32 %v1461_v48, %v429_v62 }
  0xbd   : > { %554 = vst [vmem:[#allocation2 + $0xa8] sm:$0xff] %v522_v60 }
  0xbe   : > { %v499_v1 = vmax.f32 %v406_v63, 0.0  ;;  %v507_v2 = vmax.f32 %v430_v0, 0.0 }
  0xbf   : > { %v453_v3 = vpop.f32.mrf.mxu2  ;;  %v477_v4 = vpop.f32.mrf.mxu3 }
  0xc0   : > { %531 = vst [vmem:[#allocation2] sm:$0xff] %v499_v1  ;;  %v454_v5 = vadd.f32 %v1461_v48, %v453_v3  ;;  %v478_v6 = vadd.f32 %v1461_v48, %v477_v4 }
  0xc1   : > { %539 = vst [vmem:[#allocation2 + $0x88] sm:$0xff] %v507_v2 }
  0xc2   : > { %v515_v7 = vmax.f32 %v454_v5, 0.0  ;;  %v523_v8 = vmax.f32 %v478_v6, 0.0 }
  0xc3   : > { %v408_v9 = vpop.f32.mrf.mxu0  ;;  %v432_v10 = vpop.f32.mrf.mxu1 }
  0xc4   : > { %547 = vst [vmem:[#allocation2 + $0x58] sm:$0xff] %v515_v7  ;;  %v409_v11 = vadd.f32 %v1461_v48, %v408_v9  ;;  %v433_v12 = vadd.f32 %v1461_v48, %v432_v10 }
  0xc5   : > { %555 = vst [vmem:[#allocation2 + $0xd0] sm:$0xff] %v523_v8 }
  0xc6   : > { %v500_v13 = vmax.f32 %v409_v11, 0.0  ;;  %v508_v14 = vmax.f32 %v433_v12, 0.0 }
  0xc7   : > { %v456_v15 = vpop.f32.mrf.mxu2  ;;  %v480_v16 = vpop.f32.mrf.mxu3 }
  0xc8   : > { %532 = vst [vmem:[#allocation2 + $0xd8] sm:$0xff] %v500_v13  ;;  %v457_v17 = vadd.f32 %v1461_v48, %v456_v15  ;;  %v481_v18 = vadd.f32 %v1461_v48, %v480_v16 }
  0xc9   : > { %540 = vst [vmem:[#allocation2 + $0xe8] sm:$0xff] %v508_v14 }
  0xca   : > { %v516_v19 = vmax.f32 %v457_v17, 0.0  ;;  %v524_v20 = vmax.f32 %v481_v18, 0.0 }
  0xcb   : > { %v411_v21 = vpop.f32.mrf.mxu0  ;;  %v435_v22 = vpop.f32.mrf.mxu1 }
  0xcc   : > { %548 = vst [vmem:[#allocation2 + $0x40] sm:$0xff] %v516_v19  ;;  %v412_v23 = vadd.f32 %v1461_v48, %v411_v21  ;;  %v436_v24 = vadd.f32 %v1461_v48, %v435_v22 }
  0xcd   : > { %556 = vst [vmem:[#allocation2 + $0x10] sm:$0xff] %v524_v20 }
  0xce   : > { %v501_v25 = vmax.f32 %v412_v23, 0.0  ;;  %v509_v26 = vmax.f32 %v436_v24, 0.0 }
  0xcf   : > { %v459_v27 = vpop.f32.mrf.mxu2  ;;  %v483_v28 = vpop.f32.mrf.mxu3 }
  0xd0   : > { %533 = vst [vmem:[#allocation2 + $0x18] sm:$0xff] %v501_v25  ;;  %v460_v29 = vadd.f32 %v1461_v48, %v459_v27  ;;  %v484_v30 = vadd.f32 %v1461_v48, %v483_v28 }
  0xd1   : > { %541 = vst [vmem:[#allocation2 + $0xb8] sm:$0xff] %v509_v26 }
  0xd2   : > { %v517_v31 = vmax.f32 %v460_v29, 0.0  ;;  %v525_v32 = vmax.f32 %v484_v30, 0.0 }
  0xd3   : > { %v414_v33 = vpop.f32.mrf.mxu0  ;;  %v438_v34 = vpop.f32.mrf.mxu1 }
  0xd4   : > { %549 = vst [vmem:[#allocation2 + $0xc8] sm:$0xff] %v517_v31  ;;  %v415_v35 = vadd.f32 %v1461_v48, %v414_v33  ;;  %v439_v36 = vadd.f32 %v1461_v48, %v438_v34 }
  0xd5   : > { %557 = vst [vmem:[#allocation2 + $0x28] sm:$0xff] %v525_v32 }
  0xd6   : > { %v502_v37 = vmax.f32 %v415_v35, 0.0  ;;  %v510_v38 = vmax.f32 %v439_v36, 0.0 }
  0xd7   : > { %v462_v39 = vpop.f32.mrf.mxu2  ;;  %v486_v40 = vpop.f32.mrf.mxu3 }
  0xd8   : > { %534 = vst [vmem:[#allocation2 + $0x50] sm:$0xff] %v502_v37  ;;  %v463_v41 = vadd.f32 %v1461_v48, %v462_v39  ;;  %v487_v42 = vadd.f32 %v1461_v48, %v486_v40 }
  0xd9   : > { %542 = vst [vmem:[#allocation2 + $0x60] sm:$0xff] %v510_v38 }
  0xda   : > { %v518_v43 = vmax.f32 %v463_v41, 0.0  ;;  %v526_v44 = vmax.f32 %v487_v42, 0.0 }
  0xdb   : > { %v417_v45 = vpop.f32.mrf.mxu0  ;;  %v441_v46 = vpop.f32.mrf.mxu1 }
  0xdc   : > { %550 = vst [vmem:[#allocation2 + $0xe0] sm:$0xff] %v518_v43  ;;  %v418_v47 = vadd.f32 %v1461_v48, %v417_v45  ;;  %v442_v49 = vadd.f32 %v1461_v48, %v441_v46 }
  0xdd   : > { %558 = vst [vmem:[#allocation2 + $0xa0] sm:$0xff] %v526_v44 }
  0xde   : > { %v503_v50 = vmax.f32 %v418_v47, 0.0  ;;  %v511_v51 = vmax.f32 %v442_v49, 0.0 }
  0xdf   : > { %v465_v52 = vpop.f32.mrf.mxu2  ;;  %v489_v53 = vpop.f32.mrf.mxu3 }
  0xe0   : > { %535 = vst [vmem:[#allocation2 + $0x68] sm:$0xff] %v503_v50  ;;  %v466_v54 = vadd.f32 %v1461_v48, %v465_v52  ;;  %v490_v55 = vadd.f32 %v1461_v48, %v489_v53 }
  0xe1   : > { %543 = vst [vmem:[#allocation2 + $0xf0] sm:$0xff] %v511_v51 }
  0xe2   : > { %v519_v56 = vmax.f32 %v466_v54, 0.0  ;;  %v527_v57 = vmax.f32 %v490_v55, 0.0 }
  0xe3   : > { %v420_v58 = vpop.f32.mrf.mxu0  ;;  %v444_v59 = vpop.f32.mrf.mxu1 }
  0xe4   : > { %551 = vst [vmem:[#allocation2 + $0x90] sm:$0xff] %v519_v56  ;;  %v421_v60 = vadd.f32 %v1461_v48, %v420_v58  ;;  %v445_v61 = vadd.f32 %v1461_v48, %v444_v59 }
  0xe5   : > { %559 = vst [vmem:[#allocation2 + $0xf8] sm:$0xff] %v527_v57 }
  0xe6   : > { %v504_v62 = vmax.f32 %v421_v60, 0.0  ;;  %v512_v63 = vmax.f32 %v445_v61, 0.0 }
  0xe7   : > { %v468_v0 = vpop.f32.mrf.mxu2  ;;  %v492_v1 = vpop.f32.mrf.mxu3 }
  0xe8   : > { %536 = vst [vmem:[#allocation2 + $0x30] sm:$0xff] %v504_v62  ;;  %v469_v2 = vadd.f32 %v1461_v48, %v468_v0  ;;  %v493_v3 = vadd.f32 %v1461_v48, %v492_v1 }
  0xe9   : > { %544 = vst [vmem:[#allocation2 + $0x8] sm:$0xff] %v512_v63 }
  0xea   : > { %v520_v4 = vmax.f32 %v469_v2, 0.0  ;;  %v528_v5 = vmax.f32 %v493_v3, 0.0 }
  0xeb   : > { %v423_v6 = vpop.f32.mrf.mxu0  ;;  %v447_v7 = vpop.f32.mrf.mxu1 }
  0xec   : > { %552 = vst [vmem:[#allocation2 + $0x70] sm:$0xff] %v520_v4  ;;  %v424_v8 = vadd.f32 %v1461_v48, %v423_v6  ;;  %v448_v9 = vadd.f32 %v1461_v48, %v447_v7 }
  0xed   : > { %560 = vst [vmem:[#allocation2 + $0x20] sm:$0xff] %v528_v5 }
  0xee   : > { %v505_v10 = vmax.f32 %v424_v8, 0.0  ;;  %v513_v11 = vmax.f32 %v448_v9, 0.0 }
  0xef   : > { %v471_v12 = vpop.f32.mrf.mxu2  ;;  %v495_v13 = vpop.f32.mrf.mxu3 }
  0xf0   : > { %537 = vst [vmem:[#allocation2 + $0x48] sm:$0xff] %v505_v10  ;;  %v472_v14 = vadd.f32 %v1461_v48, %v471_v12  ;;  %v496_v15 = vadd.f32 %v1461_v48, %v495_v13 }
  0xf1   : > { %545 = vst [vmem:[#allocation2 + $0x78] sm:$0xff] %v513_v11 }
  0xf2   : > { %v521_v16 = vmax.f32 %v472_v14, 0.0  ;;  %v529_v17 = vmax.f32 %v496_v15, 0.0 }
  0xf4   : > { %553 = vst [vmem:[#allocation2 + $0xc0] sm:$0xff] %v521_v16 }
  0xf5   : > { %561 = vst [vmem:[#allocation2 + $0x98] sm:$0xff] %v529_v17 }
  0xf6 PF: > { %v609_v18 = vld [vmem:[%s1365_s18 + $0x78] sm:$0xff]  ;;  %v608_v19 = vld [vmem:[%s1365_s18 + $0x70] sm:$0xff]  ;;  %v607_v20 = vld [vmem:[%s1365_s18 + $0x68] sm:$0xff]  ;;  %p1095_p8 = scmp.ne.s32.totalorder %s1260_s26, 1 }
  0xf7   : > { %1148 = vmatpush.msra.mxu2 %v609_v18  ;;  %1149 = vmatpush.msra.mxu3 %v609_v18  ;;  %v606_v48 = vld [vmem:[%s1365_s18 + $0x60] sm:$0xff]  ;;  %v605_v21 = vld [vmem:[%s1365_s18 + $0x58] sm:$0xff]  ;;  %v604_v22 = vld [vmem:[%s1365_s18 + $0x50] sm:$0xff]  ;;  %s927_s26 = sld [smem:[#allocation3]] (!%p1095_p8) }
  0xf8   : > { %614 = vmatpush.msra.mxu0 %v609_v18  ;;  %1147 = vmatpush.msra.mxu1 %v609_v18  ;;  %v603_v23 = vld [vmem:[%s1365_s18 + $0x48] sm:$0xff]  ;;  %v602_v24 = vld [vmem:[%s1365_s18 + $0x40] sm:$0xff]  ;;  %v601_v25 = vld [vmem:[%s1365_s18 + $0x38] sm:$0xff] }
  0xf9   : > { %1151 = vmatpush.msra.mxu2 %v608_v19  ;;  %1152 = vmatpush.msra.mxu3 %v608_v19  ;;  %v600_v26 = vld [vmem:[%s1365_s18 + $0x30] sm:$0xff]  ;;  %v599_v27 = vld [vmem:[%s1365_s18 + $0x28] sm:$0xff]  ;;  %v598_v28 = vld [vmem:[%s1365_s18 + $0x20] sm:$0xff] }
  0xfa   : > { %615 = vmatpush.msra.mxu0 %v608_v19  ;;  %1150 = vmatpush.msra.mxu1 %v608_v19  ;;  %v597_v29 = vld [vmem:[%s1365_s18 + $0x18] sm:$0xff]  ;;  %v596_v30 = vld [vmem:[%s1365_s18 + $0x10] sm:$0xff]  ;;  %v595_v31 = vld [vmem:[%s1365_s18 + $0x8] sm:$0xff] }
  0xfb   : > { %1154 = vmatpush.msra.mxu2 %v607_v20  ;;  %1155 = vmatpush.msra.mxu3 %v607_v20  ;;  %v594_v32 = vld [vmem:[%s1365_s18] sm:$0xff]  ;;  %v578_v33 = vld [vmem:[#allocation2 + $0x38] sm:$0xff]  ;;  %v586_v34 = vld [vmem:[#allocation2 + $0xa8] sm:$0xff] }
  0xfc   : > { %616 = vmatpush.msra.mxu0 %v607_v20  ;;  %1153 = vmatpush.msra.mxu1 %v607_v20  ;;  %v562_v35 = vld [vmem:[#allocation2 + $0xb0] sm:$0xff]  ;;  %v570_v36 = vld [vmem:[#allocation2 + $0x80] sm:$0xff]  ;;  %v579_v37 = vld [vmem:[#allocation2 + $0x58] sm:$0xff] }
  0xfd   : > { %1157 = vmatpush.msra.mxu2 %v606_v48  ;;  %1158 = vmatpush.msra.mxu3 %v606_v48  ;;  %v587_v38 = vld [vmem:[#allocation2 + $0xd0] sm:$0xff]  ;;  %v563_v39 = vld [vmem:[#allocation2] sm:$0xff]  ;;  %v571_v40 = vld [vmem:[#allocation2 + $0x88] sm:$0xff] }
  0xfe   : > { %617 = vmatpush.msra.mxu0 %v606_v48  ;;  %1156 = vmatpush.msra.mxu1 %v606_v48  ;;  %v580_v41 = vld [vmem:[#allocation2 + $0x40] sm:$0xff]  ;;  %v588_v42 = vld [vmem:[#allocation2 + $0x10] sm:$0xff]  ;;  %v564_v43 = vld [vmem:[#allocation2 + $0xd8] sm:$0xff] }
  0xff   : > { %1160 = vmatpush.msra.mxu2 %v605_v21  ;;  %1161 = vmatpush.msra.mxu3 %v605_v21  ;;  %v572_v44 = vld [vmem:[#allocation2 + $0xe8] sm:$0xff]  ;;  %v565_v47 = vld [vmem:[#allocation2 + $0x18] sm:$0xff]  ;;  %v582_v50 = vld [vmem:[#allocation2 + $0xe0] sm:$0xff] }
 0x100   : > { %618 = vmatpush.msra.mxu0 %v605_v21  ;;  %1159 = vmatpush.msra.mxu1 %v605_v21  ;;  %v581_v45 = vld [vmem:[#allocation2 + $0xc8] sm:$0xff]  ;;  %v573_v49 = vld [vmem:[#allocation2 + $0xb8] sm:$0xff]  ;;  %v590_v51 = vld [vmem:[#allocation2 + $0xa0] sm:$0xff] }
 0x101   : > { %1163 = vmatpush.msra.mxu2 %v604_v22  ;;  %1164 = vmatpush.msra.mxu3 %v604_v22  ;;  %v589_v46 = vld [vmem:[#allocation2 + $0x28] sm:$0xff]  ;;  %v566_v52 = vld [vmem:[#allocation2 + $0x50] sm:$0xff]  ;;  %v574_v53 = vld [vmem:[#allocation2 + $0x60] sm:$0xff] }
 0x102   : > { %619 = vmatpush.msra.mxu0 %v604_v22  ;;  %1162 = vmatpush.msra.mxu1 %v604_v22  ;;  %v583_v54 = vld [vmem:[#allocation2 + $0x90] sm:$0xff]  ;;  %v591_v55 = vld [vmem:[#allocation2 + $0xf8] sm:$0xff]  ;;  %v567_v56 = vld [vmem:[#allocation2 + $0x68] sm:$0xff] }
 0x103   : > { %1166 = vmatpush.msra.mxu2 %v603_v23  ;;  %1167 = vmatpush.msra.mxu3 %v603_v23  ;;  %v575_v57 = vld [vmem:[#allocation2 + $0xf0] sm:$0xff]  ;;  %v592_v59 = vld [vmem:[#allocation2 + $0x20] sm:$0xff]  ;;  %v576_v61 = vld [vmem:[#allocation2 + $0x8] sm:$0xff] }
 0x104   : > { %620 = vmatpush.msra.mxu0 %v603_v23  ;;  %1165 = vmatpush.msra.mxu1 %v603_v23  ;;  %v584_v58 = vld [vmem:[#allocation2 + $0x70] sm:$0xff]  ;;  %v585_v62 = vld [vmem:[#allocation2 + $0xc0] sm:$0xff]  ;;  %v593_v63 = vld [vmem:[#allocation2 + $0x98] sm:$0xff] }
 0x105   : > { %1169 = vmatpush.msra.mxu2 %v602_v24  ;;  %1170 = vmatpush.msra.mxu3 %v602_v24  ;;  %v568_v60 = vld [vmem:[#allocation2 + $0x30] sm:$0xff]  ;;  %v569_v0 = vld [vmem:[#allocation2 + $0x48] sm:$0xff]  ;;  %v577_v1 = vld [vmem:[#allocation2 + $0x78] sm:$0xff] }
 0x106   : > { %621 = vmatpush.msra.mxu0 %v602_v24  ;;  %1168 = vmatpush.msra.mxu1 %v602_v24  ;;  %v1516_v2 = vld [vmem:[%s322_s14] ss:$0 sm:$0xff] }
 0x107   : > { %1172 = vmatpush.msra.mxu2 %v601_v25  ;;  %1173 = vmatpush.msra.mxu3 %v601_v25 }
 0x108   : > { %622 = vmatpush.msra.mxu0 %v601_v25  ;;  %1171 = vmatpush.msra.mxu1 %v601_v25 }
 0x109   : > { %1175 = vmatpush.msra.mxu2 %v600_v26  ;;  %1176 = vmatpush.msra.mxu3 %v600_v26 }
 0x10a   : > { %623 = vmatpush.msra.mxu0 %v600_v26  ;;  %1174 = vmatpush.msra.mxu1 %v600_v26 }
 0x10b   : > { %1178 = vmatpush.msra.mxu2 %v599_v27  ;;  %1179 = vmatpush.msra.mxu3 %v599_v27 }
 0x10c   : > { %624 = vmatpush.msra.mxu0 %v599_v27  ;;  %1177 = vmatpush.msra.mxu1 %v599_v27 }
 0x10d   : > { %1181 = vmatpush.msra.mxu2 %v598_v28  ;;  %1182 = vmatpush.msra.mxu3 %v598_v28 }
 0x10e   : > { %625 = vmatpush.msra.mxu0 %v598_v28  ;;  %1180 = vmatpush.msra.mxu1 %v598_v28 }
 0x10f   : > { %1184 = vmatpush.msra.mxu2 %v597_v29  ;;  %1185 = vmatpush.msra.mxu3 %v597_v29 }
 0x110   : > { %626 = vmatpush.msra.mxu0 %v597_v29  ;;  %1183 = vmatpush.msra.mxu1 %v597_v29 }
 0x111   : > { %1187 = vmatpush.msra.mxu2 %v596_v30  ;;  %1188 = vmatpush.msra.mxu3 %v596_v30 }
 0x112   : > { %627 = vmatpush.msra.mxu0 %v596_v30  ;;  %1186 = vmatpush.msra.mxu1 %v596_v30 }
 0x113   : > { %1190 = vmatpush.msra.mxu2 %v595_v31  ;;  %1191 = vmatpush.msra.mxu3 %v595_v31 }
 0x114   : > { %628 = vmatpush.msra.mxu0 %v595_v31  ;;  %1189 = vmatpush.msra.mxu1 %v595_v31 }
 0x115   : > { %1193 = vmatpush.msra.mxu2 %v594_v32  ;;  %1194 = vmatpush.msra.mxu3 %v594_v32 }
 0x116   : > { %678 = vmatmul.f32.vlgmr.msra.gmra.mxu2 %v578_v33  ;;  %702 = vmatmul.f32.vlgmr.msra.gmra.mxu3 %v586_v34 }
 0x117   : > { %629 = vmatpush.msra.mxu0 %v594_v32  ;;  %1192 = vmatpush.msra.mxu1 %v594_v32 }
 0x118   : > { %630 = vmatmul.f32.vlgmr.msra.gmra.mxu0 %v562_v35  ;;  %654 = vmatmul.f32.vlgmr.msra.gmra.mxu1 %v570_v36 }
 0x11e   : > { %681 = vmatmul.f32.gmra.mxu2 %v579_v37  ;;  %705 = vmatmul.f32.gmra.mxu3 %v587_v38 }
 0x120   : > { %633 = vmatmul.f32.gmra.mxu0 %v563_v39  ;;  %657 = vmatmul.f32.gmra.mxu1 %v571_v40 }
 0x126   : > { %684 = vmatmul.f32.gmra.mxu2 %v580_v41  ;;  %708 = vmatmul.f32.gmra.mxu3 %v588_v42 }
 0x128   : > { %636 = vmatmul.f32.gmra.mxu0 %v564_v43  ;;  %660 = vmatmul.f32.gmra.mxu1 %v572_v44 }
 0x12e   : > { %687 = vmatmul.f32.gmra.mxu2 %v581_v45  ;;  %711 = vmatmul.f32.gmra.mxu3 %v589_v46 }
 0x130   : > { %639 = vmatmul.f32.gmra.mxu0 %v565_v47  ;;  %663 = vmatmul.f32.gmra.mxu1 %v573_v49 }
 0x136   : > { %690 = vmatmul.f32.gmra.mxu2 %v582_v50  ;;  %714 = vmatmul.f32.gmra.mxu3 %v590_v51 }
 0x138   : > { %642 = vmatmul.f32.gmra.mxu0 %v566_v52  ;;  %666 = vmatmul.f32.gmra.mxu1 %v574_v53 }
 0x13e   : > { %693 = vmatmul.f32.gmra.mxu2 %v583_v54  ;;  %717 = vmatmul.f32.gmra.mxu3 %v591_v55 }
 0x140   : > { %645 = vmatmul.f32.gmra.mxu0 %v567_v56  ;;  %669 = vmatmul.f32.gmra.mxu1 %v575_v57 }
 0x146   : > { %696 = vmatmul.f32.gmra.mxu2 %v584_v58  ;;  %720 = vmatmul.f32.gmra.mxu3 %v592_v59 }
 0x148   : > { %648 = vmatmul.f32.gmra.mxu0 %v568_v60  ;;  %672 = vmatmul.f32.gmra.mxu1 %v576_v61 }
 0x14e   : > { %699 = vmatmul.f32.gmra.mxu2 %v585_v62  ;;  %723 = vmatmul.f32.gmra.mxu3 %v593_v63 }
 0x150   : > { %651 = vmatmul.f32.gmra.mxu0 %v569_v0  ;;  %675 = vmatmul.f32.gmra.mxu1 %v577_v1 }
 0x195   : > { %v631_v3 = vpop.f32.mrf.mxu0  ;;  %v655_v4 = vpop.f32.mrf.mxu1 }
 0x196   : > { %v632_v5 = vadd.f32 %v1516_v2, %v631_v3  ;;  %v656_v6 = vadd.f32 %v1516_v2, %v655_v4 }
 0x198   : > { %v727_v7 = vmax.f32 %v632_v5, 0.0  ;;  %v735_v8 = vmax.f32 %v656_v6, 0.0 }
 0x199   : > { %v679_v9 = vpop.f32.mrf.mxu2  ;;  %v703_v10 = vpop.f32.mrf.mxu3 }
 0x19a   : > { %759 = vst [vmem:[#allocation2 + $0xb0] sm:$0xff] %v727_v7  ;;  %v680_v11 = vadd.f32 %v1516_v2, %v679_v9  ;;  %v704_v12 = vadd.f32 %v1516_v2, %v703_v10 }
 0x19b   : > { %767 = vst [vmem:[#allocation2 + $0x80] sm:$0xff] %v735_v8 }
 0x19c   : > { %v743_v13 = vmax.f32 %v680_v11, 0.0  ;;  %v751_v14 = vmax.f32 %v704_v12, 0.0 }
 0x19d   : > { %v634_v15 = vpop.f32.mrf.mxu0  ;;  %v658_v16 = vpop.f32.mrf.mxu1 }
 0x19e   : > { %775 = vst [vmem:[#allocation2 + $0x38] sm:$0xff] %v743_v13  ;;  %v635_v17 = vadd.f32 %v1516_v2, %v634_v15  ;;  %v659_v18 = vadd.f32 %v1516_v2, %v658_v16 }
 0x19f   : > { %783 = vst [vmem:[#allocation2 + $0xa8] sm:$0xff] %v751_v14 }
 0x1a0   : > { %v728_v19 = vmax.f32 %v635_v17, 0.0  ;;  %v736_v20 = vmax.f32 %v659_v18, 0.0 }
 0x1a1   : > { %v682_v48 = vpop.f32.mrf.mxu2  ;;  %v706_v21 = vpop.f32.mrf.mxu3 }
 0x1a2   : > { %760 = vst [vmem:[#allocation2] sm:$0xff] %v728_v19  ;;  %v683_v22 = vadd.f32 %v1516_v2, %v682_v48  ;;  %v707_v23 = vadd.f32 %v1516_v2, %v706_v21 }
 0x1a3   : > { %768 = vst [vmem:[#allocation2 + $0x88] sm:$0xff] %v736_v20 }
 0x1a4   : > { %v744_v24 = vmax.f32 %v683_v22, 0.0  ;;  %v752_v25 = vmax.f32 %v707_v23, 0.0 }
 0x1a5   : > { %v637_v26 = vpop.f32.mrf.mxu0  ;;  %v661_v27 = vpop.f32.mrf.mxu1 }
 0x1a6   : > { %776 = vst [vmem:[#allocation2 + $0x58] sm:$0xff] %v744_v24  ;;  %v638_v28 = vadd.f32 %v1516_v2, %v637_v26  ;;  %v662_v29 = vadd.f32 %v1516_v2, %v661_v27 }
 0x1a7   : > { %784 = vst [vmem:[#allocation2 + $0xd0] sm:$0xff] %v752_v25 }
 0x1a8   : > { %v729_v30 = vmax.f32 %v638_v28, 0.0  ;;  %v737_v31 = vmax.f32 %v662_v29, 0.0 }
 0x1a9   : > { %v685_v32 = vpop.f32.mrf.mxu2  ;;  %v709_v33 = vpop.f32.mrf.mxu3 }
 0x1aa   : > { %761 = vst [vmem:[#allocation2 + $0xd8] sm:$0xff] %v729_v30  ;;  %v686_v34 = vadd.f32 %v1516_v2, %v685_v32  ;;  %v710_v35 = vadd.f32 %v1516_v2, %v709_v33 }
 0x1ab   : > { %769 = vst [vmem:[#allocation2 + $0xe8] sm:$0xff] %v737_v31 }
 0x1ac   : > { %v745_v36 = vmax.f32 %v686_v34, 0.0  ;;  %v753_v37 = vmax.f32 %v710_v35, 0.0 }
 0x1ad   : > { %v640_v38 = vpop.f32.mrf.mxu0  ;;  %v664_v39 = vpop.f32.mrf.mxu1 }
 0x1ae   : > { %777 = vst [vmem:[#allocation2 + $0x40] sm:$0xff] %v745_v36  ;;  %v641_v40 = vadd.f32 %v1516_v2, %v640_v38  ;;  %v665_v41 = vadd.f32 %v1516_v2, %v664_v39 }
 0x1af   : > { %785 = vst [vmem:[#allocation2 + $0x10] sm:$0xff] %v753_v37 }
 0x1b0   : > { %v730_v42 = vmax.f32 %v641_v40, 0.0  ;;  %v738_v43 = vmax.f32 %v665_v41, 0.0 }
 0x1b1   : > { %v688_v44 = vpop.f32.mrf.mxu2  ;;  %v712_v45 = vpop.f32.mrf.mxu3 }
 0x1b2   : > { %762 = vst [vmem:[#allocation2 + $0x18] sm:$0xff] %v730_v42  ;;  %v689_v46 = vadd.f32 %v1516_v2, %v688_v44  ;;  %v713_v47 = vadd.f32 %v1516_v2, %v712_v45 }
 0x1b3   : > { %770 = vst [vmem:[#allocation2 + $0xb8] sm:$0xff] %v738_v43 }
 0x1b4   : > { %v746_v49 = vmax.f32 %v689_v46, 0.0  ;;  %v754_v50 = vmax.f32 %v713_v47, 0.0 }
 0x1b5   : > { %v643_v51 = vpop.f32.mrf.mxu0  ;;  %v667_v52 = vpop.f32.mrf.mxu1 }
 0x1b6   : > { %778 = vst [vmem:[#allocation2 + $0xc8] sm:$0xff] %v746_v49  ;;  %v644_v53 = vadd.f32 %v1516_v2, %v643_v51  ;;  %v668_v54 = vadd.f32 %v1516_v2, %v667_v52 }
 0x1b7   : > { %786 = vst [vmem:[#allocation2 + $0x28] sm:$0xff] %v754_v50 }
 0x1b8   : > { %v731_v55 = vmax.f32 %v644_v53, 0.0  ;;  %v739_v56 = vmax.f32 %v668_v54, 0.0 }
 0x1b9   : > { %v691_v57 = vpop.f32.mrf.mxu2  ;;  %v715_v58 = vpop.f32.mrf.mxu3 }
 0x1ba   : > { %763 = vst [vmem:[#allocation2 + $0x50] sm:$0xff] %v731_v55  ;;  %v692_v59 = vadd.f32 %v1516_v2, %v691_v57  ;;  %v716_v60 = vadd.f32 %v1516_v2, %v715_v58 }
 0x1bb   : > { %771 = vst [vmem:[#allocation2 + $0x60] sm:$0xff] %v739_v56 }
 0x1bc   : > { %v747_v61 = vmax.f32 %v692_v59, 0.0  ;;  %v755_v62 = vmax.f32 %v716_v60, 0.0 }
 0x1bd   : > { %v646_v63 = vpop.f32.mrf.mxu0  ;;  %v670_v0 = vpop.f32.mrf.mxu1 }
 0x1be   : > { %779 = vst [vmem:[#allocation2 + $0xe0] sm:$0xff] %v747_v61  ;;  %v647_v1 = vadd.f32 %v1516_v2, %v646_v63  ;;  %v671_v3 = vadd.f32 %v1516_v2, %v670_v0 }
 0x1bf   : > { %787 = vst [vmem:[#allocation2 + $0xa0] sm:$0xff] %v755_v62 }
 0x1c0   : > { %v732_v4 = vmax.f32 %v647_v1, 0.0  ;;  %v740_v5 = vmax.f32 %v671_v3, 0.0 }
 0x1c1   : > { %v694_v6 = vpop.f32.mrf.mxu2  ;;  %v718_v7 = vpop.f32.mrf.mxu3 }
 0x1c2   : > { %764 = vst [vmem:[#allocation2 + $0x68] sm:$0xff] %v732_v4  ;;  %v695_v8 = vadd.f32 %v1516_v2, %v694_v6  ;;  %v719_v9 = vadd.f32 %v1516_v2, %v718_v7 }
 0x1c3   : > { %772 = vst [vmem:[#allocation2 + $0xf0] sm:$0xff] %v740_v5 }
 0x1c4   : > { %v748_v10 = vmax.f32 %v695_v8, 0.0  ;;  %v756_v11 = vmax.f32 %v719_v9, 0.0 }
 0x1c5   : > { %v649_v12 = vpop.f32.mrf.mxu0  ;;  %v673_v13 = vpop.f32.mrf.mxu1 }
 0x1c6   : > { %780 = vst [vmem:[#allocation2 + $0x90] sm:$0xff] %v748_v10  ;;  %v650_v14 = vadd.f32 %v1516_v2, %v649_v12  ;;  %v674_v15 = vadd.f32 %v1516_v2, %v673_v13 }
 0x1c7   : > { %788 = vst [vmem:[#allocation2 + $0xf8] sm:$0xff] %v756_v11 }
 0x1c8   : > { %v733_v16 = vmax.f32 %v650_v14, 0.0  ;;  %v741_v17 = vmax.f32 %v674_v15, 0.0 }
 0x1c9   : > { %v697_v18 = vpop.f32.mrf.mxu2  ;;  %v721_v19 = vpop.f32.mrf.mxu3 }
 0x1ca   : > { %765 = vst [vmem:[#allocation2 + $0x30] sm:$0xff] %v733_v16  ;;  %v698_v20 = vadd.f32 %v1516_v2, %v697_v18  ;;  %v722_v48 = vadd.f32 %v1516_v2, %v721_v19 }
 0x1cb   : > { %773 = vst [vmem:[#allocation2 + $0x8] sm:$0xff] %v741_v17 }
 0x1cc   : > { %v749_v21 = vmax.f32 %v698_v20, 0.0  ;;  %v757_v22 = vmax.f32 %v722_v48, 0.0 }
 0x1cd   : > { %v652_v23 = vpop.f32.mrf.mxu0  ;;  %v676_v24 = vpop.f32.mrf.mxu1 }
 0x1ce   : > { %781 = vst [vmem:[#allocation2 + $0x70] sm:$0xff] %v749_v21  ;;  %v653_v25 = vadd.f32 %v1516_v2, %v652_v23  ;;  %v677_v26 = vadd.f32 %v1516_v2, %v676_v24 }
 0x1cf   : > { %789 = vst [vmem:[#allocation2 + $0x20] sm:$0xff] %v757_v22 }
 0x1d0   : > { %v734_v27 = vmax.f32 %v653_v25, 0.0  ;;  %v742_v28 = vmax.f32 %v677_v26, 0.0 }
 0x1d1   : > { %v700_v29 = vpop.f32.mrf.mxu2  ;;  %v724_v30 = vpop.f32.mrf.mxu3 }
 0x1d2   : > { %766 = vst [vmem:[#allocation2 + $0x48] sm:$0xff] %v734_v27  ;;  %v701_v31 = vadd.f32 %v1516_v2, %v700_v29  ;;  %v725_v32 = vadd.f32 %v1516_v2, %v724_v30 }
 0x1d3   : > { %774 = vst [vmem:[#allocation2 + $0x78] sm:$0xff] %v742_v28  ;;  %794 = sbr.rel (%p1095_p8) target bundleno = 675 (0x2a3), region = 56 }
 0x1d4   : > { %v750_v33 = vmax.f32 %v701_v31, 0.0  ;;  %v758_v34 = vmax.f32 %v725_v32, 0.0 }
 0x1d6   : > { %782 = vst [vmem:[#allocation2 + $0xc0] sm:$0xff] %v750_v33 }
 0x1d7   : > { %790 = vst [vmem:[#allocation2 + $0x98] sm:$0xff] %v758_v34 }
 0x1d8   : > { %v797_v35 = vld [vmem:[#allocation2 + $0xd8] sm:$0xff]  ;;  %v1554_v36 = vld [vmem:[%s1706_s5] ss:$0 sm:$0xff]  ;;  %v795_v37 = vld [vmem:[#allocation2 + $0xb0] sm:$0xff]  ;;  %vm961_vm0 = vcmask 7168  }
 0x1d9   : > { %v799_v38 = vld [vmem:[#allocation2 + $0x50] sm:$0xff]  ;;  %v833_v39 = vmul.f32 %v1554_v36, %v797_v35  ;;  %v831_v2 = vmul.f32 %v1554_v36, %v795_v37  ;;  %v798_v41 = vld [vmem:[#allocation2 + $0x18] sm:$0xff]  ;;  %v796_v42 = vld [vmem:[#allocation2] sm:$0xff]  ;;  %v1588_v37 = vstv %s927_s26 }
 0x1da   : > { %v835_v40 = vmul.f32 %v1554_v36, %v799_v38  ;;  %v800_v43 = vld [vmem:[#allocation2 + $0x68] sm:$0xff]  ;;  %v834_v44 = vmul.f32 %v1554_v36, %v798_v41  ;;  %v832_v45 = vmul.f32 %v1554_v36, %v796_v42  ;;  %v801_v49 = vld [vmem:[#allocation2 + $0x30] sm:$0xff]  ;;  %v803_v50 = vld [vmem:[#allocation2 + $0x80] sm:$0xff] }
 0x1db   : > { %867 = vadd.xlane.f32.xlu1 %v833_v39  ;;  %863 = vadd.xlane.f32.xlu0 %v831_v2  ;;  %v836_v46 = vmul.f32 %v1554_v36, %v800_v43  ;;  %v802_v47 = vld [vmem:[#allocation2 + $0x48] sm:$0xff]  ;;  %v837_v52 = vmul.f32 %v1554_v36, %v801_v49  ;;  %v839_v53 = vmul.f32 %v1554_v36, %v803_v50  ;;  %v806_v56 = vld [vmem:[#allocation2 + $0xb8] sm:$0xff]  ;;  %v808_v60 = vld [vmem:[#allocation2 + $0xf0] sm:$0xff] }
 0x1dc   : > { %871 = vadd.xlane.f32.xlu2 %v835_v40  ;;  %v838_v51 = vmul.f32 %v1554_v36, %v802_v47  ;;  %v805_v54 = vld [vmem:[#allocation2 + $0xe8] sm:$0xff]  ;;  %v842_v59 = vmul.f32 %v1554_v36, %v806_v56  ;;  %v807_v61 = vld [vmem:[#allocation2 + $0x60] sm:$0xff]  ;;  %v844_v63 = vmul.f32 %v1554_v36, %v808_v60  ;;  %v811_v3 = vld [vmem:[#allocation2 + $0x38] sm:$0xff] }
 0x1dd   : > { %v804_v55 = vld [vmem:[#allocation2 + $0x88] sm:$0xff]  ;;  %v841_v57 = vmul.f32 %v1554_v36, %v805_v54  ;;  %v843_v0 = vmul.f32 %v1554_v36, %v807_v61  ;;  %v810_v4 = vld [vmem:[#allocation2 + $0x78] sm:$0xff]  ;;  %v847_v6 = vmul.f32 %v1554_v36, %v811_v3  ;;  %v813_v10 = vld [vmem:[#allocation2 + $0x40] sm:$0xff] }
 0x1de   : > { %v840_v58 = vmul.f32 %v1554_v36, %v804_v55  ;;  %v809_v62 = vld [vmem:[#allocation2 + $0x8] sm:$0xff]  ;;  %v812_v5 = vld [vmem:[#allocation2 + $0x58] sm:$0xff]  ;;  %v846_v7 = vmul.f32 %v1554_v36, %v810_v4  ;;  %v815_v11 = vld [vmem:[#allocation2 + $0xe0] sm:$0xff]  ;;  %v849_v13 = vmul.f32 %v1554_v36, %v813_v10 }
 0x1df   : > { %v845_v1 = vmul.f32 %v1554_v36, %v809_v62  ;;  %v848_v8 = vmul.f32 %v1554_v36, %v812_v5  ;;  %v814_v9 = vld [vmem:[#allocation2 + $0xc8] sm:$0xff]  ;;  %v851_v14 = vmul.f32 %v1554_v36, %v815_v11  ;;  %v817_v15 = vld [vmem:[#allocation2 + $0x70] sm:$0xff]  ;;  %v818_v17 = vld [vmem:[#allocation2 + $0xc0] sm:$0xff] }
 0x1e0   : > { %v850_v12 = vmul.f32 %v1554_v36, %v814_v9  ;;  %v816_v16 = vld [vmem:[#allocation2 + $0x90] sm:$0xff]  ;;  %v853_v18 = vmul.f32 %v1554_v36, %v817_v15  ;;  %v854_v20 = vmul.f32 %v1554_v36, %v818_v17  ;;  %v819_v21 = vld [vmem:[#allocation2 + $0xa8] sm:$0xff]  ;;  %v823_v26 = vld [vmem:[#allocation2 + $0xa0] sm:$0xff] }
 0x1e1   : > { %v852_v19 = vmul.f32 %v1554_v36, %v816_v16  ;;  %v820_v48 = vld [vmem:[#allocation2 + $0xd0] sm:$0xff]  ;;  %v855_v24 = vmul.f32 %v1554_v36, %v819_v21  ;;  %v822_v27 = vld [vmem:[#allocation2 + $0x28] sm:$0xff]  ;;  %v824_v28 = vld [vmem:[#allocation2 + $0xf8] sm:$0xff]  ;;  %v859_v29 = vmul.f32 %v1554_v36, %v823_v26 }
 0x1e2   : > { %v821_v22 = vld [vmem:[#allocation2 + $0x10] sm:$0xff]  ;;  %v856_v23 = vmul.f32 %v1554_v36, %v820_v48  ;;  %v858_v30 = vmul.f32 %v1554_v36, %v822_v27  ;;  %v860_v31 = vmul.f32 %v1554_v36, %v824_v28  ;;  %v826_v32 = vld [vmem:[#allocation2 + $0x98] sm:$0xff]  ;;  %v825_v33 = vld [vmem:[#allocation2 + $0x20] sm:$0xff] }
 0x1e3   : > { %869 = vadd.xlane.f32.xlu1 %v834_v44  ;;  %865 = vadd.xlane.f32.xlu0 %v832_v45  ;;  %v857_v25 = vmul.f32 %v1554_v36, %v821_v22  ;;  %v862_v34 = vmul.f32 %v1554_v36, %v826_v32  ;;  %v861_v35 = vmul.f32 %v1554_v36, %v825_v33 }
 0x1e4   : > { %873 = vadd.xlane.f32.xlu2 %v836_v46 }
 0x1eb   : > { %877 = vadd.xlane.f32.xlu1 %v838_v51  ;;  %875 = vadd.xlane.f32.xlu0 %v837_v52 }
 0x1ec   : > { %879 = vadd.xlane.f32.xlu2 %v839_v53 }
 0x1f3   : > { %883 = vadd.xlane.f32.xlu1 %v841_v57  ;;  %881 = vadd.xlane.f32.xlu0 %v840_v58 }
 0x1f4   : > { %885 = vadd.xlane.f32.xlu2 %v842_v59 }
 0x1fb   : > { %889 = vadd.xlane.f32.xlu1 %v844_v63  ;;  %887 = vadd.xlane.f32.xlu0 %v843_v0 }
 0x1fc   : > { %891 = vadd.xlane.f32.xlu2 %v845_v1 }
 0x203   : > { %895 = vadd.xlane.f32.xlu1 %v847_v6  ;;  %893 = vadd.xlane.f32.xlu0 %v846_v7 }
 0x204   : > { %897 = vadd.xlane.f32.xlu2 %v848_v8 }
 0x20b   : > { %901 = vadd.xlane.f32.xlu1 %v850_v12  ;;  %899 = vadd.xlane.f32.xlu0 %v849_v13 }
 0x20c   : > { %903 = vadd.xlane.f32.xlu2 %v851_v14 }
 0x213   : > { %907 = vadd.xlane.f32.xlu1 %v853_v18  ;;  %905 = vadd.xlane.f32.xlu0 %v852_v19 }
 0x214   : > { %909 = vadd.xlane.f32.xlu2 %v854_v20 }
 0x21b   : > { %913 = vadd.xlane.f32.xlu1 %v856_v23  ;;  %911 = vadd.xlane.f32.xlu0 %v855_v24 }
 0x21c   : > { %915 = vadd.xlane.f32.xlu2 %v857_v25 }
 0x223   : > { %919 = vadd.xlane.f32.xlu1 %v859_v29  ;;  %917 = vadd.xlane.f32.xlu0 %v858_v30 }
 0x224   : > { %921 = vadd.xlane.f32.xlu2 %v860_v31 }
 0x22b   : > { %925 = vadd.xlane.f32.xlu1 %v862_v34  ;;  %923 = vadd.xlane.f32.xlu0 %v861_v35 }
 0x24e   : > { %v868_v38 = vpop.xlane.xlu1 %867  ;;  %v864_v39 = vpop.xlane.xlu0 %863 }
 0x24f   : > { %v931_v2 = vadd.f32 %v1588_v37, %v868_v38  ;;  %v929_v40 = vadd.f32 %v1588_v37, %v864_v39  ;;  %v872_v41 = vpop.xlane.xlu2 %871 }
 0x250   : > { %v933_v42 = vadd.f32 %v1588_v37, %v872_v41 }
 0x251   : > { %964 = vst.msk [vmem:[%s1375_s24 + $0x10] sm:$0xff] %vm961_vm0, %v931_v2 }
 0x252   : > { %962 = vst.msk [vmem:[%s1375_s24] sm:$0xff] %vm961_vm0, %v929_v40 }
 0x253   : > { %966 = vst.msk [vmem:[%s1375_s24 + $0x20] sm:$0xff] %vm961_vm0, %v933_v42 }
 0x256   : > { %v870_v36 = vpop.xlane.xlu1 %869  ;;  %v866_v43 = vpop.xlane.xlu0 %865 }
 0x257   : > { %v932_v44 = vadd.f32 %v1588_v37, %v870_v36  ;;  %v930_v45 = vadd.f32 %v1588_v37, %v866_v43  ;;  %v874_v46 = vpop.xlane.xlu2 %873 }
 0x258   : > { %v934_v47 = vadd.f32 %v1588_v37, %v874_v46 }
 0x259   : > { %965 = vst.msk [vmem:[%s1375_s24 + $0x18] sm:$0xff] %vm961_vm0, %v932_v44 }
 0x25a   : > { %963 = vst.msk [vmem:[%s1375_s24 + $0x8] sm:$0xff] %vm961_vm0, %v930_v45 }
 0x25b   : > { %967 = vst.msk [vmem:[%s1375_s24 + $0x28] sm:$0xff] %vm961_vm0, %v934_v47 }
 0x25e   : > { %v878_v49 = vpop.xlane.xlu1 %877  ;;  %v876_v50 = vpop.xlane.xlu0 %875 }
 0x25f   : > { %v936_v51 = vadd.f32 %v1588_v37, %v878_v49  ;;  %v935_v52 = vadd.f32 %v1588_v37, %v876_v50  ;;  %v880_v53 = vpop.xlane.xlu2 %879 }
 0x260   : > { %v937_v54 = vadd.f32 %v1588_v37, %v880_v53 }
 0x261   : > { %969 = vst.msk [vmem:[%s1375_s24 + $0x38] sm:$0xff] %vm961_vm0, %v936_v51 }
 0x262   : > { %968 = vst.msk [vmem:[%s1375_s24 + $0x30] sm:$0xff] %vm961_vm0, %v935_v52 }
 0x263   : > { %970 = vst.msk [vmem:[%s1375_s24 + $0x40] sm:$0xff] %vm961_vm0, %v937_v54 }
 0x266   : > { %v884_v55 = vpop.xlane.xlu1 %883  ;;  %v882_v56 = vpop.xlane.xlu0 %881 }
 0x267   : > { %v939_v57 = vadd.f32 %v1588_v37, %v884_v55  ;;  %v938_v58 = vadd.f32 %v1588_v37, %v882_v56  ;;  %v886_v59 = vpop.xlane.xlu2 %885 }
 0x268   : > { %v940_v60 = vadd.f32 %v1588_v37, %v886_v59 }
 0x269   : > { %972 = vst.msk [vmem:[%s1375_s24 + $0x50] sm:$0xff] %vm961_vm0, %v939_v57 }
 0x26a   : > { %971 = vst.msk [vmem:[%s1375_s24 + $0x48] sm:$0xff] %vm961_vm0, %v938_v58 }
 0x26b   : > { %973 = vst.msk [vmem:[%s1375_s24 + $0x58] sm:$0xff] %vm961_vm0, %v940_v60 }
 0x26e   : > { %v890_v61 = vpop.xlane.xlu1 %889  ;;  %v888_v62 = vpop.xlane.xlu0 %887 }
 0x26f   : > { %v942_v63 = vadd.f32 %v1588_v37, %v890_v61  ;;  %v941_v0 = vadd.f32 %v1588_v37, %v888_v62  ;;  %v892_v1 = vpop.xlane.xlu2 %891 }
 0x270   : > { %v943_v3 = vadd.f32 %v1588_v37, %v892_v1 }
 0x271   : > { %975 = vst.msk [vmem:[%s1375_s24 + $0x68] sm:$0xff] %vm961_vm0, %v942_v63 }
 0x272   : > { %974 = vst.msk [vmem:[%s1375_s24 + $0x60] sm:$0xff] %vm961_vm0, %v941_v0 }
 0x273   : > { %976 = vst.msk [vmem:[%s1375_s24 + $0x70] sm:$0xff] %vm961_vm0, %v943_v3 }
 0x276   : > { %v896_v4 = vpop.xlane.xlu1 %895  ;;  %v894_v5 = vpop.xlane.xlu0 %893 }
 0x277   : > { %v945_v6 = vadd.f32 %v1588_v37, %v896_v4  ;;  %v944_v7 = vadd.f32 %v1588_v37, %v894_v5  ;;  %v898_v8 = vpop.xlane.xlu2 %897 }
 0x278   : > { %v946_v9 = vadd.f32 %v1588_v37, %v898_v8 }
 0x279   : > { %978 = vst.msk [vmem:[%s1375_s24 + $0x80] sm:$0xff] %vm961_vm0, %v945_v6 }
 0x27a   : > { %977 = vst.msk [vmem:[%s1375_s24 + $0x78] sm:$0xff] %vm961_vm0, %v944_v7 }
 0x27b   : > { %979 = vst.msk [vmem:[%s1375_s24 + $0x88] sm:$0xff] %vm961_vm0, %v946_v9 }
 0x27e   : > { %v902_v10 = vpop.xlane.xlu1 %901  ;;  %v900_v11 = vpop.xlane.xlu0 %899 }
 0x27f   : > { %v948_v12 = vadd.f32 %v1588_v37, %v902_v10  ;;  %v947_v13 = vadd.f32 %v1588_v37, %v900_v11  ;;  %v904_v14 = vpop.xlane.xlu2 %903 }
 0x280   : > { %v949_v15 = vadd.f32 %v1588_v37, %v904_v14 }
 0x281   : > { %981 = vst.msk [vmem:[%s1375_s24 + $0x98] sm:$0xff] %vm961_vm0, %v948_v12 }
 0x282   : > { %980 = vst.msk [vmem:[%s1375_s24 + $0x90] sm:$0xff] %vm961_vm0, %v947_v13 }
 0x283   : > { %982 = vst.msk [vmem:[%s1375_s24 + $0xa0] sm:$0xff] %vm961_vm0, %v949_v15 }
 0x286   : > { %v908_v16 = vpop.xlane.xlu1 %907  ;;  %v906_v17 = vpop.xlane.xlu0 %905 }
 0x287   : > { %v951_v18 = vadd.f32 %v1588_v37, %v908_v16  ;;  %v950_v19 = vadd.f32 %v1588_v37, %v906_v17  ;;  %v910_v20 = vpop.xlane.xlu2 %909 }
 0x288   : > { %v952_v48 = vadd.f32 %v1588_v37, %v910_v20 }
 0x289   : > { %984 = vst.msk [vmem:[%s1375_s24 + $0xb0] sm:$0xff] %vm961_vm0, %v951_v18 }
 0x28a   : > { %983 = vst.msk [vmem:[%s1375_s24 + $0xa8] sm:$0xff] %vm961_vm0, %v950_v19 }
 0x28b   : > { %985 = vst.msk [vmem:[%s1375_s24 + $0xb8] sm:$0xff] %vm961_vm0, %v952_v48 }
 0x28e   : > { %v914_v21 = vpop.xlane.xlu1 %913  ;;  %v912_v22 = vpop.xlane.xlu0 %911 }
 0x28f   : > { %v954_v23 = vadd.f32 %v1588_v37, %v914_v21  ;;  %v953_v24 = vadd.f32 %v1588_v37, %v912_v22  ;;  %v916_v25 = vpop.xlane.xlu2 %915 }
 0x290   : > { %v955_v26 = vadd.f32 %v1588_v37, %v916_v25 }
 0x291   : > { %987 = vst.msk [vmem:[%s1375_s24 + $0xc8] sm:$0xff] %vm961_vm0, %v954_v23 }
 0x292   : > { %986 = vst.msk [vmem:[%s1375_s24 + $0xc0] sm:$0xff] %vm961_vm0, %v953_v24 }
 0x293   : > { %988 = vst.msk [vmem:[%s1375_s24 + $0xd0] sm:$0xff] %vm961_vm0, %v955_v26 }
 0x296   : > { %v920_v27 = vpop.xlane.xlu1 %919  ;;  %v918_v28 = vpop.xlane.xlu0 %917 }
 0x297   : > { %v957_v29 = vadd.f32 %v1588_v37, %v920_v27  ;;  %v956_v30 = vadd.f32 %v1588_v37, %v918_v28  ;;  %v922_v31 = vpop.xlane.xlu2 %921 }
 0x298   : > { %v958_v32 = vadd.f32 %v1588_v37, %v922_v31 }
 0x299   : > { %990 = vst.msk [vmem:[%s1375_s24 + $0xe0] sm:$0xff] %vm961_vm0, %v957_v29 }
 0x29a   : > { %989 = vst.msk [vmem:[%s1375_s24 + $0xd8] sm:$0xff] %vm961_vm0, %v956_v30 }
 0x29b   : > { %991 = vst.msk [vmem:[%s1375_s24 + $0xe8] sm:$0xff] %vm961_vm0, %v958_v32 }
 0x29e   : > { %v926_v33 = vpop.xlane.xlu1 %925  ;;  %v924_v34 = vpop.xlane.xlu0 %923 }
 0x29f   : > { %v960_v35 = vadd.f32 %v1588_v37, %v926_v33  ;;  %v959_v38 = vadd.f32 %v1588_v37, %v924_v34 }
 0x2a1   : > { %993 = vst.msk [vmem:[%s1375_s24 + $0xf8] sm:$0xff] %vm961_vm0, %v960_v35 }
 0x2a2   : > { %992 = vst.msk [vmem:[%s1375_s24 + $0xf0] sm:$0xff] %vm961_vm0, %v959_v38 }
 0x2a3 PF: > { %s18_s30 = sadd.s32 1, %s1276_s30   ;;  %s1709_s26 = smov %s1268_s28 }
 0x2a4   : > { %p15_p9 = scmp.ge.s32.totalorder %s18_s30, 6   ;;  %s1710_s27 = smov %s1272_s29 }
 0x2a5   : > { %s1711_s28 = smov %s1714_s6  ;;  %s1712_s29 = smov %s1718_s8 }
 0x2a6   :  { %17 = sbr.rel (!%p15_p9) target bundleno = 3 (0x3), region = 92 }

</bundles_post_ra>
